<compile_context>
chip_gen: v7x
topology: tpu7x:2x2x1
jax: 0.10.0
libtpu: 0.0.40
codegen_flags: <defaults>
</compile_context>

<pallas_src>
import math
import functools

import jax
import jax.numpy as jnp
from jax.experimental import pallas as pl
from jax.experimental.pallas import tpu as pltpu


def _round_up(x, m):
    return ((x + m - 1) // m) * m


def _cdiv(a, b):
    return (a + b - 1) // b


def _ffn_kernel(x_ref, w1_ref, b1_ref, w2_ref, b2_ref, w3_ref, b3_ref,
                o_ref, acc_ref):
    h = pl.program_id(1)

    @pl.when(h == 0)
    def _():
        acc_ref[...] = jnp.zeros_like(acc_ref)

    x = x_ref[...]                                               # (tm, D) bf16
    # fc1 / fc2 over this hidden slice: bf16 MXU matmul, f32 accumulation.
    x1 = jnp.dot(x, w1_ref[...], preferred_element_type=jnp.float32) + b1_ref[...]
    x2 = jnp.dot(x, w2_ref[...], preferred_element_type=jnp.float32) + b2_ref[...]
    # SiLU(x1) * x2 in f32 (VPU elementwise; sigmoid goes through the EUP).
    g = (x1 * jax.nn.sigmoid(x1)) * x2
    # TODO(synk): dropout1 is eval-mode identity here; training-mode dropout
    # would use pltpu.prng_seed + pltpu.stateful_bernoulli on `g`.
    # fc3 partial product for this hidden slice, accumulated in f32.
    acc_ref[...] += jnp.dot(g.astype(jnp.bfloat16), w3_ref[...],
                            preferred_element_type=jnp.float32)

    @pl.when(h == pl.num_programs(1) - 1)
    def _():
        o_ref[...] = (acc_ref[...] + b3_ref[...]).astype(o_ref.dtype)


@functools.partial(jax.jit, static_argnames=("tm", "th"))
def feed_forward(x, w1, b1, w2, b2, w3, b3, *, tm=256, th=2048):
    """x: (batch, seq, d_model). Weights w* are (in, out); biases b* are (1, out)."""
    batch, seq, d_model = x.shape
    d_hidden = w1.shape[1]
    M = batch * seq

    # Lane / MXU aligned padded dims.
    D_pad = _round_up(d_model, 128)
    H128 = _round_up(d_hidden, 128)
    M128 = _round_up(M, 128)

    tm_eff = min(tm, M128)                      # MXU-row aligned M tile
    n_m = _cdiv(M128, tm_eff)
    M_pad = n_m * tm_eff

    n_h = _cdiv(H128, th)                       # hidden reduction tiles
    th_eff = _round_up(_cdiv(H128, n_h), 128)
    H_pad = n_h * th_eff

    # Zero-pad (exact in the valid region) and cast matmul operands to bf16.
    # Biases stay f32; bias add and the gate math run in f32.
    x2d = jnp.pad(x.reshape(M, d_model),
                  ((0, M_pad - M), (0, D_pad - d_model))).astype(jnp.bfloat16)
    w1p = jnp.pad(w1, ((0, D_pad - d_model), (0, H_pad - d_hidden))).astype(jnp.bfloat16)
    w2p = jnp.pad(w2, ((0, D_pad - d_model), (0, H_pad - d_hidden))).astype(jnp.bfloat16)
    w3p = jnp.pad(w3, ((0, H_pad - d_hidden), (0, D_pad - d_model))).astype(jnp.bfloat16)
    b1p = jnp.pad(b1, ((0, 0), (0, H_pad - d_hidden))).astype(jnp.float32)
    b2p = jnp.pad(b2, ((0, 0), (0, H_pad - d_hidden))).astype(jnp.float32)
    b3p = jnp.pad(b3, ((0, 0), (0, D_pad - d_model))).astype(jnp.float32)

    out_dtype = x.dtype

    # Explicit VMEM budget: double-buffered tiles + f32 accumulator, with margin.
    vmem_est = (
        2 * tm_eff * D_pad * 2                                   # x (bf16)
        + 2 * 2 * D_pad * th_eff * 2                             # w1, w2 (bf16)
        + 2 * th_eff * D_pad * 2                                 # w3 (bf16)
        + 2 * 2 * 8 * th_eff * 4                                 # b1, b2 (f32)
        + 2 * 8 * D_pad * 4                                      # b3 (f32)
        + 2 * tm_eff * D_pad * jnp.dtype(out_dtype).itemsize     # out
        + tm_eff * D_pad * 4                                     # acc scratch
    )
    vmem_limit = int(min(100 * 2**20, max(3 * vmem_est + 4 * 2**20, 8 * 2**20)))

    cost = pl.CostEstimate(
        flops=6 * M * d_model * d_hidden + 4 * M * d_hidden,
        transcendentals=M * d_hidden,
        bytes_accessed=(2 * M * d_model * jnp.dtype(out_dtype).itemsize
                        + 3 * d_model * d_hidden * 2
                        + (2 * d_hidden + d_model) * 4),
    )

    out = pl.pallas_call(
        _ffn_kernel,
        out_shape=jax.ShapeDtypeStruct((M_pad, D_pad), out_dtype),
        grid_spec=pltpu.PrefetchScalarGridSpec(
            num_scalar_prefetch=0,
            grid=(n_m, n_h),
            in_specs=[
                pl.BlockSpec((tm_eff, D_pad), lambda i, h: (i, 0)),    # x tile
                pl.BlockSpec((D_pad, th_eff), lambda i, h: (0, h)),    # w1 col-slice
                pl.BlockSpec((1, th_eff), lambda i, h: (0, h)),        # b1 slice
                pl.BlockSpec((D_pad, th_eff), lambda i, h: (0, h)),    # w2 col-slice
                pl.BlockSpec((1, th_eff), lambda i, h: (0, h)),        # b2 slice
                pl.BlockSpec((th_eff, D_pad), lambda i, h: (h, 0)),    # w3 row-slice
                pl.BlockSpec((1, D_pad), lambda i, h: (0, 0)),         # b3
            ],
            out_specs=pl.BlockSpec((tm_eff, D_pad), lambda i, h: (i, 0)),
            scratch_shapes=[pltpu.VMEM((tm_eff, D_pad), jnp.float32)],
        ),
        compiler_params=pltpu.CompilerParams(
            dimension_semantics=("parallel", "arbitrary"),
            vmem_limit_bytes=vmem_limit,
        ),
        cost_estimate=cost,
    )(x2d, w1p, b1p, w2p, b2p, w3p, b3p)

    return out[:M, :d_model].reshape(batch, seq, d_model)


def _init_linear(key, in_features, out_features, dtype=jnp.float32):
    """Deterministic init matching torch.nn.Linear default (Kaiming-uniform-ish)."""
    kw, kb = jax.random.split(key)
    bound = 1.0 / math.sqrt(in_features)
    # torch stores weight as (out, in); we keep the transposed (in, out) layout.
    w = jax.random.uniform(kw, (in_features, out_features), dtype,
                           minval=-bound, maxval=bound)
    b = jax.random.uniform(kb, (1, out_features), dtype,
                           minval=-bound, maxval=bound)
    return w, b


def _reference(x, w1, b1, w2, b2, w3, b3, cast_bf16=False):
    if cast_bf16:
        cast = lambda a: a.astype(jnp.bfloat16).astype(jnp.float32)
    else:
        cast = lambda a: a.astype(jnp.float32)
    xb = cast(x)
    x1 = xb @ cast(w1) + b1[0]
    x2 = xb @ cast(w2) + b2[0]
    h = jax.nn.silu(x1) * x2
    if cast_bf16:
        h = h.astype(jnp.bfloat16).astype(jnp.float32)
    return h @ cast(w3) + b3[0]


if __name__ == "__main__":
    batch, seq, d_model = 2, 8, 32
    dropout_rate = 0.1  # eval-mode -> identity

    key = jax.random.PRNGKey(0)
    kx, k1, k2, k3 = jax.random.split(key, 4)

    x = jax.random.normal(kx, (batch, seq, d_model), jnp.float32)
    w1, b1 = _init_linear(k1, d_model, d_model * 2)
    w2, b2 = _init_linear(k2, d_model, d_model * 2)
    w3, b3 = _init_linear(k3, d_model * 2, d_model)

    out = feed_forward(x, w1, b1, w2, b2, w3, b3)
    out = jax.block_until_ready(out)
    assert out.shape == (batch, seq, d_model)

    # Kernel uses bf16 matmul operands with f32 accumulation: compare tightly
    # against a bf16-consistent reference, loosely against the pure-f32 one.
    ref_bf16 = _reference(x, w1, b1, w2, b2, w3, b3, cast_bf16=True)
    ref_f32 = _reference(x, w1, b1, w2, b2, w3, b3, cast_bf16=False)
    assert jnp.allclose(out, ref_bf16, atol=1e-2, rtol=1e-2)
    assert jnp.allclose(out, ref_f32, atol=1e-1, rtol=1e-1)

    print("KERNEL_OK")
</pallas_src>

<mosaic_0001>
module attributes {stable_mosaic.version = 11 : i64} {
  func.func @_ffn_kernel(%arg0: i32, %arg1: i32, %arg2: memref<128x128xbf16, #tpu.memory_space<vmem>>, %arg3: memref<128x128xbf16, #tpu.memory_space<vmem>>, %arg4: memref<1x128xf32, #tpu.memory_space<vmem>>, %arg5: memref<128x128xbf16, #tpu.memory_space<vmem>>, %arg6: memref<1x128xf32, #tpu.memory_space<vmem>>, %arg7: memref<128x128xbf16, #tpu.memory_space<vmem>>, %arg8: memref<1x128xf32, #tpu.memory_space<vmem>>, %arg9: memref<128x128xf32, #tpu.memory_space<vmem>>, %arg10: memref<128x128xf32, #tpu.memory_space<vmem>>) attributes {dimension_semantics = [#tpu.dimension_semantics<parallel>, #tpu.dimension_semantics<arbitrary>], iteration_bounds = array<i64: 1, 1>, scalar_prefetch = 0 : i64, scratch_operands = 1 : i64, tpu.core_type = #tpu.core_type<tc>, window_params = [{transform_indices = @transform_0, window_bounds = array<i64: 128, 128>}, {transform_indices = @transform_1, window_bounds = array<i64: 128, 128>}, {transform_indices = @transform_2, window_bounds = array<i64: 1, 128>}, {transform_indices = @transform_3, window_bounds = array<i64: 128, 128>}, {transform_indices = @transform_4, window_bounds = array<i64: 1, 128>}, {transform_indices = @transform_5, window_bounds = array<i64: 128, 128>}, {pipeline_mode = #tpu.pipeline_mode<synchronous>, transform_indices = @transform_6, window_bounds = array<i64: 1, 128>}, {transform_indices = @transform_7, window_bounds = array<i64: 128, 128>}]} {
    %c0_i32 = arith.constant 0 : i32
    %0 = arith.cmpi eq, %arg1, %c0_i32 : i32
    %1 = arith.extui %0 : i1 to i32
    %c0_i32_0 = arith.constant 0 : i32
    %2 = arith.cmpi ne, %1, %c0_i32_0 : i32
    scf.if %2 {
      %cst_21 = arith.constant 0.000000e+00 : f32
      %30 = vector.broadcast %cst_21 : f32 to vector<128x128xf32>
      %c0_22 = arith.constant 0 : index
      %c0_23 = arith.constant 0 : index
      %31 = vector.load %arg10[%c0_22, %c0_23] : memref<128x128xf32, #tpu.memory_space<vmem>>, vector<128x128xf32>
      tpu.vector_store %arg10[%c0_22, %c0_23], %30 {strides = array<i32>} : memref<128x128xf32, #tpu.memory_space<vmem>>, vector<128x128xf32>,
    } else {
    }
    %c0 = arith.constant 0 : index
    %c0_1 = arith.constant 0 : index
    %3 = vector.load %arg2[%c0, %c0_1] : memref<128x128xbf16, #tpu.memory_space<vmem>>, vector<128x128xbf16>
    %c0_2 = arith.constant 0 : index
    %c0_3 = arith.constant 0 : index
    %4 = vector.load %arg3[%c0_2, %c0_3] : memref<128x128xbf16, #tpu.memory_space<vmem>>, vector<128x128xbf16>
    %cst = arith.constant dense<0.000000e+00> : vector<128x128xf32>
    %5 = tpu.matmul %3, %4, %cst {dimension_numbers = #tpu.dot_dimension_numbers<[1], [0], [0], [1], [0, 0, 1, 1], [], []>} : vector<128x128xbf16>, vector<128x128xbf16>, vector<128x128xf32> -> vector<128x128xf32>
    %c0_4 = arith.constant 0 : index
    %c0_5 = arith.constant 0 : index
    %6 = vector.load %arg4[%c0_4, %c0_5] : memref<1x128xf32, #tpu.memory_space<vmem>>, vector<1x128xf32>
    %7 = vector.broadcast %6 : vector<1x128xf32> to vector<128x128xf32>
    %8 = arith.addf %5, %7 : vector<128x128xf32>
    %c0_6 = arith.constant 0 : index
    %c0_7 = arith.constant 0 : index
    %9 = vector.load %arg5[%c0_6, %c0_7] : memref<128x128xbf16, #tpu.memory_space<vmem>>, vector<128x128xbf16>
    %cst_8 = arith.constant dense<0.000000e+00> : vector<128x128xf32>
    %10 = tpu.matmul %3, %9, %cst_8 {dimension_numbers = #tpu.dot_dimension_numbers<[1], [0], [0], [1], [0, 0, 1, 1], [], []>} : vector<128x128xbf16>, vector<128x128xbf16>, vector<128x128xf32> -> vector<128x128xf32>
    %c0_9 = arith.constant 0 : index
    %c0_10 = arith.constant 0 : index
    %11 = vector.load %arg6[%c0_9, %c0_10] : memref<1x128xf32, #tpu.memory_space<vmem>>, vector<1x128xf32>
    %12 = vector.broadcast %11 : vector<1x128xf32> to vector<128x128xf32>
    %13 = arith.addf %10, %12 : vector<128x128xf32>
    %14 = arith.negf %8 : vector<128x128xf32>
    %15 = math.exp %14 : vector<128x128xf32>
    %cst_11 = arith.constant 1.000000e+00 : f32
    %16 = vector.broadcast %cst_11 : f32 to vector<128x128xf32>
    %17 = arith.addf %16, %15 : vector<128x128xf32>
    %18 = arith.divf %16, %17 : vector<128x128xf32>
    %19 = arith.mulf %8, %18 : vector<128x128xf32>
    %20 = arith.mulf %19, %13 : vector<128x128xf32>
    %c0_12 = arith.constant 0 : index
    %c0_13 = arith.constant 0 : index
    %21 = vector.load %arg10[%c0_12, %c0_13] : memref<128x128xf32, #tpu.memory_space<vmem>>, vector<128x128xf32>
    %22 = arith.truncf %20 : vector<128x128xf32> to vector<128x128xbf16>
    %c0_14 = arith.constant 0 : index
    %c0_15 = arith.constant 0 : index
    %23 = vector.load %arg7[%c0_14, %c0_15] : memref<128x128xbf16, #tpu.memory_space<vmem>>, vector<128x128xbf16>
    %cst_16 = arith.constant dense<0.000000e+00> : vector<128x128xf32>
    %24 = tpu.matmul %22, %23, %cst_16 {dimension_numbers = #tpu.dot_dimension_numbers<[1], [0], [0], [1], [0, 0, 1, 1], [], []>} : vector<128x128xbf16>, vector<128x128xbf16>, vector<128x128xf32> -> vector<128x128xf32>
    %25 = arith.addf %21, %24 : vector<128x128xf32>
    %c0_17 = arith.constant 0 : index
    %c0_18 = arith.constant 0 : index
    %26 = vector.load %arg10[%c0_17, %c0_18] : memref<128x128xf32, #tpu.memory_space<vmem>>, vector<128x128xf32>
    tpu.vector_store %arg10[%c0_17, %c0_18], %25 {strides = array<i32>} : memref<128x128xf32, #tpu.memory_space<vmem>>, vector<128x128xf32>,
    %c0_i32_19 = arith.constant 0 : i32
    %27 = arith.cmpi eq, %arg1, %c0_i32_19 : i32
    %28 = arith.extui %27 : i1 to i32
    %c0_i32_20 = arith.constant 0 : i32
    %29 = arith.cmpi ne, %28, %c0_i32_20 : i32
    scf.if %29 {
      %c0_21 = arith.constant 0 : index
      %c0_22 = arith.constant 0 : index
      %30 = vector.load %arg10[%c0_21, %c0_22] : memref<128x128xf32, #tpu.memory_space<vmem>>, vector<128x128xf32>
      %c0_23 = arith.constant 0 : index
      %c0_24 = arith.constant 0 : index
      %31 = vector.load %arg8[%c0_23, %c0_24] : memref<1x128xf32, #tpu.memory_space<vmem>>, vector<1x128xf32>
      %32 = vector.broadcast %31 : vector<1x128xf32> to vector<128x128xf32>
      %33 = arith.addf %30, %32 : vector<128x128xf32>
      %c0_25 = arith.constant 0 : index
      %c0_26 = arith.constant 0 : index
      %34 = vector.load %arg9[%c0_25, %c0_26] : memref<128x128xf32, #tpu.memory_space<vmem>>, vector<128x128xf32>
      tpu.vector_store %arg9[%c0_25, %c0_26], %33 {strides = array<i32>} : memref<128x128xf32, #tpu.memory_space<vmem>>, vector<128x128xf32>,
    } else {
    }
    return
  }
  func.func @transform_0(%arg0: i32, %arg1: i32) -> (i32, i32) {
    %c0_i32 = arith.constant 0 : i32
    %c0_i32_0 = arith.constant 0 : i32
    return %arg0, %c0_i32 : i32, i32
  }
  func.func @transform_1(%arg0: i32, %arg1: i32) -> (i32, i32) {
    %c0_i32 = arith.constant 0 : i32
    %c0_i32_0 = arith.constant 0 : i32
    return %c0_i32, %arg1 : i32, i32
  }
  func.func @transform_2(%arg0: i32, %arg1: i32) -> (i32, i32) {
    %c0_i32 = arith.constant 0 : i32
    %c0_i32_0 = arith.constant 0 : i32
    return %c0_i32, %arg1 : i32, i32
  }
  func.func @transform_3(%arg0: i32, %arg1: i32) -> (i32, i32) {
    %c0_i32 = arith.constant 0 : i32
    %c0_i32_0 = arith.constant 0 : i32
    return %c0_i32, %arg1 : i32, i32
  }
  func.func @transform_4(%arg0: i32, %arg1: i32) -> (i32, i32) {
    %c0_i32 = arith.constant 0 : i32
    %c0_i32_0 = arith.constant 0 : i32
    return %c0_i32, %arg1 : i32, i32
  }
  func.func @transform_5(%arg0: i32, %arg1: i32) -> (i32, i32) {
    %c0_i32 = arith.constant 0 : i32
    %c0_i32_0 = arith.constant 0 : i32
    return %arg1, %c0_i32 : i32, i32
  }
  func.func @transform_6(%arg0: i32, %arg1: i32) -> (i32, i32) {
    %c0_i32 = arith.constant 0 : i32
    %c0_i32_0 = arith.constant 0 : i32
    %c0_i32_1 = arith.constant 0 : i32
    return %c0_i32, %c0_i32_0 : i32, i32
  }
  func.func @transform_7(%arg0: i32, %arg1: i32) -> (i32, i32) {
    %c0_i32 = arith.constant 0 : i32
    %c0_i32_0 = arith.constant 0 : i32
    return %arg0, %c0_i32 : i32, i32
  }
}

</mosaic_0001>

<bundles_post_ra>
// kernel: feed_forward.1
= control target key start
LH: loop header
LB: loop body
LE: loop exit
PB: predicated region body
PF: predicated region fallthrough
CT: control target
= control target key end

     0   :  { %s1502_s1 = inlined_call_operand.vmem [shape: bf16[128,128], index: 1, kind: input, shape index: {}]   ;;  %s1503_s3 = inlined_call_operand.vmem [shape: bf16[128,128], index: 3, kind: input, shape index: {}]   ;;  %s1504_s0 = inlined_call_operand.vmem [shape: bf16[128,128], index: 0, kind: input, shape index: {}]   ;;  %s1505_s5 = inlined_call_operand.vmem [shape: bf16[128,128], index: 5, kind: input, shape index: {}]   ;;  %s1506_s2 = inlined_call_operand.vmem [shape: f32[1,128], index: 2, kind: input, shape index: {}]   ;;  %s1507_s4 = inlined_call_operand.vmem [shape: f32[1,128], index: 4, kind: input, shape index: {}]   ;;  %s1508_s6 = inlined_call_operand.vmem [shape: f32[1,128], index: 6, kind: input, shape index: {}]   ;;  %s1509_s7 = inlined_call_operand.vmem [shape: f32[128,128], index: 7, kind: output, shape index: {}]  }
   0x1   :  { %v1065_v0 = vld [vmem:[%s1502_s1] sm:$0xff]   ;;  %v1066_v1 = vld [vmem:[%s1502_s1 + $0x8] sm:$0xff]   ;;  %v1067_v2 = vld [vmem:[%s1502_s1 + $0x10] sm:$0xff]  }
   0x2   :  { %953 = vmatprep.subr.bf16.mxu0 %v1065_v0  ;;  %v1072_v3 = vld [vmem:[%s1503_s3] sm:$0xff]   ;;  %v1068_v4 = vld [vmem:[%s1502_s1 + $0x18] sm:$0xff]   ;;  %v1074_v5 = vld [vmem:[%s1503_s3 + $0x8] sm:$0xff]  }
   0x3   :  { %954 = vmatpush3.bf16.msra.mxu0 %v1065_v0  ;;  %985 = vmatprep.subr.bf16.mxu1 %v1072_v3  ;;  %v1075_v6 = vld [vmem:[%s1504_s0] sm:$0xff]   ;;  %v1077_v8 = vld [vmem:[%s1503_s3 + $0x10] sm:$0xff]   ;;  %v1078_v9 = vld [vmem:[%s1503_s3 + $0x18] sm:$0xff]  }
   0x4   :  { %955 = vmatprep.subr.bf16.mxu0 %v1066_v1  ;;  %986 = vmatpush3.bf16.msra.mxu1 %v1072_v3  ;;  %v1069_v7 = vld [vmem:[%s1502_s1 + $0x20] sm:$0xff]   ;;  %v1070_v10 = vld [vmem:[%s1502_s1 + $0x28] sm:$0xff]   ;;  %v1071_v12 = vld [vmem:[%s1502_s1 + $0x30] sm:$0xff]  }
   0x5   :  { %987 = vmatprep.subr.bf16.mxu1 %v1074_v5  ;;  %969 = vmatprep.mubr.bf16.mxu0 %v1075_v6  ;;  %v1081_v11 = vld [vmem:[%s1503_s3 + $0x20] sm:$0xff]   ;;  %v1082_v13 = vld [vmem:[%s1503_s3 + $0x28] sm:$0xff]   ;;  %v1073_v14 = vld [vmem:[%s1502_s1 + $0x38] sm:$0xff]  }
   0x6   :  { %1001 = vmatprep.mubr.bf16.mxu1 %v1075_v6  ;;  %v1085_v15 = vld [vmem:[%s1503_s3 + $0x30] sm:$0xff]   ;;  %v1076_v16 = vld [vmem:[%s1504_s0 + $0x8] sm:$0xff]   ;;  %v1086_v18 = vld [vmem:[%s1503_s3 + $0x38] sm:$0xff]  }
   0x7   :  { %956 = vmatpush3.bf16.msra.mxu0 %v1066_v1  ;;  %v1079_v17 = vld [vmem:[%s1504_s0 + $0x10] sm:$0xff]   ;;  %v1080_v19 = vld [vmem:[%s1504_s0 + $0x18] sm:$0xff]   ;;  %v1083_v20 = vld [vmem:[%s1504_s0 + $0x20] sm:$0xff]  }
   0x8   :  { %957 = vmatprep.subr.bf16.mxu0 %v1067_v2  ;;  %988 = vmatpush3.bf16.msra.mxu1 %v1074_v5  ;;  %v1084_v21 = vld [vmem:[%s1504_s0 + $0x28] sm:$0xff]   ;;  %v1087_v22 = vld [vmem:[%s1504_s0 + $0x30] sm:$0xff]   ;;  %v1088_v23 = vld [vmem:[%s1504_s0 + $0x38] sm:$0xff]  }
   0x9   :  { %989 = vmatprep.subr.bf16.mxu1 %v1077_v8  ;;  %v1089_v24 = vld [vmem:[%s1505_s5] sm:$0xff]   ;;  %v1090_v25 = vld [vmem:[%s1505_s5 + $0x8] sm:$0xff]   ;;  %v1091_v26 = vld [vmem:[%s1505_s5 + $0x10] sm:$0xff]  }
   0xa   :  { %v1092_v27 = vld [vmem:[%s1505_s5 + $0x18] sm:$0xff]   ;;  %v1093_v28 = vld [vmem:[%s1505_s5 + $0x20] sm:$0xff]   ;;  %v1094_v29 = vld [vmem:[%s1505_s5 + $0x28] sm:$0xff]  }
   0xb   :  { %958 = vmatpush3.bf16.msra.mxu0 %v1067_v2  ;;  %v1095_v30 = vld [vmem:[%s1505_s5 + $0x30] sm:$0xff]   ;;  %v1096_v31 = vld [vmem:[%s1505_s5 + $0x38] sm:$0xff]   ;;  %v1300_v32 = vld [vmem:[%s1506_s2] ss:$0 sm:$0xff] }
   0xc   :  { %959 = vmatprep.subr.bf16.mxu0 %v1068_v4  ;;  %990 = vmatpush3.bf16.msra.mxu1 %v1077_v8 }
   0xd   :  { %991 = vmatprep.subr.bf16.mxu1 %v1078_v9 }
   0xf   :  { %960 = vmatpush3.bf16.msra.mxu0 %v1068_v4 }
  0x10   :  { %961 = vmatprep.subr.bf16.mxu0 %v1069_v7  ;;  %992 = vmatpush3.bf16.msra.mxu1 %v1078_v9 }
  0x11   :  { %993 = vmatprep.subr.bf16.mxu1 %v1081_v11 }
  0x13   :  { %962 = vmatpush3.bf16.msra.mxu0 %v1069_v7 }
  0x14   :  { %963 = vmatprep.subr.bf16.mxu0 %v1070_v10  ;;  %994 = vmatpush3.bf16.msra.mxu1 %v1081_v11 }
  0x15   :  { %995 = vmatprep.subr.bf16.mxu1 %v1082_v13 }
  0x17   :  { %964 = vmatpush3.bf16.msra.mxu0 %v1070_v10 }
  0x18   :  { %965 = vmatprep.subr.bf16.mxu0 %v1071_v12  ;;  %996 = vmatpush3.bf16.msra.mxu1 %v1082_v13 }
  0x19   :  { %997 = vmatprep.subr.bf16.mxu1 %v1085_v15 }
  0x1b   :  { %966 = vmatpush3.bf16.msra.mxu0 %v1071_v12 }
  0x1c   :  { %967 = vmatprep.subr.bf16.mxu0 %v1073_v14  ;;  %998 = vmatpush3.bf16.msra.mxu1 %v1085_v15 }
  0x1d   :  { %999 = vmatprep.subr.bf16.mxu1 %v1086_v18 }
  0x1f   :  { %968 = vmatpush3.bf16.msra.mxu0 %v1073_v14 }
  0x20   :  { %1000 = vmatpush3.bf16.msra.mxu1 %v1086_v18  ;;  %1017 = vmatprep.subr.bf16.mxu0 %v1089_v24 }
  0x21   :  { %1049 = vmatprep.subr.bf16.mxu1 %v1089_v24 }
  0x22   :  { %970 = vmatmul.mubr.bf16.vlgmr.msra.gmra.mrb[0].mxu0 %v1076_v16 }
  0x23   :  { %973 = vmatprep.mubr.bf16.mxu0 %v1079_v17  ;;  %1002 = vmatmul.mubr.bf16.vlgmr.msra.gmra.mrb[0].mxu1 %v1076_v16 }
  0x24   :  { %1005 = vmatprep.mubr.bf16.mxu1 %v1079_v17  ;;  %1018 = vmatpush3.bf16.msra.mxu0 %v1089_v24 }
  0x25   :  { %1057 = vmatpush3.bf16.msra.mxu1 %v1089_v24  ;;  %1019 = vmatprep.subr.bf16.mxu0 %v1090_v25 }
  0x26   :  { %1050 = vmatprep.subr.bf16.mxu1 %v1090_v25 }
  0x28   :  { %1020 = vmatpush3.bf16.msra.mxu0 %v1090_v25 }
  0x29   :  { %1058 = vmatpush3.bf16.msra.mxu1 %v1090_v25  ;;  %1021 = vmatprep.subr.bf16.mxu0 %v1091_v26 }
  0x2a   :  { %974 = vmatmul.mubr.bf16.gmra.mrb[4].mxu0 %v1080_v19  ;;  %1051 = vmatprep.subr.bf16.mxu1 %v1091_v26 }
  0x2b   :  { %977 = vmatprep.mubr.bf16.mxu0 %v1083_v20  ;;  %1006 = vmatmul.mubr.bf16.gmra.mrb[4].mxu1 %v1080_v19 }
  0x2c   :  { %1009 = vmatprep.mubr.bf16.mxu1 %v1083_v20  ;;  %1022 = vmatpush3.bf16.msra.mxu0 %v1091_v26 }
  0x2d   :  { %1059 = vmatpush3.bf16.msra.mxu1 %v1091_v26  ;;  %1023 = vmatprep.subr.bf16.mxu0 %v1092_v27 }
  0x2e   :  { %1052 = vmatprep.subr.bf16.mxu1 %v1092_v27 }
  0x30   :  { %1024 = vmatpush3.bf16.msra.mxu0 %v1092_v27 }
  0x31   :  { %1060 = vmatpush3.bf16.msra.mxu1 %v1092_v27  ;;  %1025 = vmatprep.subr.bf16.mxu0 %v1093_v28 }
  0x32   :  { %978 = vmatmul.mubr.bf16.gmra.mrb[8].mxu0 %v1084_v21  ;;  %1053 = vmatprep.subr.bf16.mxu1 %v1093_v28 }
  0x33   :  { %981 = vmatprep.mubr.bf16.mxu0 %v1087_v22  ;;  %1010 = vmatmul.mubr.bf16.gmra.mrb[8].mxu1 %v1084_v21 }
  0x34   :  { %1013 = vmatprep.mubr.bf16.mxu1 %v1087_v22  ;;  %1026 = vmatpush3.bf16.msra.mxu0 %v1093_v28  ;;  %v1369_v22 = vld [vmem:[%s1507_s4] ss:$0 sm:$0xff] }
  0x35   :  { %1061 = vmatpush3.bf16.msra.mxu1 %v1093_v28  ;;  %1027 = vmatprep.subr.bf16.mxu0 %v1094_v29 }
  0x36   :  { %1054 = vmatprep.subr.bf16.mxu1 %v1094_v29 }
  0x38   :  { %1028 = vmatpush3.bf16.msra.mxu0 %v1094_v29 }
  0x39   :  { %1062 = vmatpush3.bf16.msra.mxu1 %v1094_v29  ;;  %1029 = vmatprep.subr.bf16.mxu0 %v1095_v30 }
  0x3a   :  { %982 = vmatmul.mubr.bf16.gmra.mrb[12].mxu0 %v1088_v23  ;;  %1055 = vmatprep.subr.bf16.mxu1 %v1095_v30 }
  0x3b   :  { %1014 = vmatmul.mubr.bf16.gmra.mrb[12].mxu1 %v1088_v23 }
  0x3c   :  { %1030 = vmatpush3.bf16.msra.mxu0 %v1095_v30 }
  0x3d   :  { %1063 = vmatpush3.bf16.msra.mxu1 %v1095_v30  ;;  %1031 = vmatprep.subr.bf16.mxu0 %v1096_v31 }
  0x3e   :  { %1056 = vmatprep.subr.bf16.mxu1 %v1096_v31 }
  0x40   :  { %1032 = vmatpush3.bf16.msra.mxu0 %v1096_v31 }
  0x41   :  { %1064 = vmatpush3.bf16.msra.mxu1 %v1096_v31 }
  0xf5   :  { %v971_v33 = vpop.f32.mrb[0].mxu0 }
  0xf6   :  { %v1303_v34 = vadd.f32 %v971_v33, %v1300_v32  ;;  %v216_v35 = vpop.f32.mrb[1].mxu0  ;;  %v1318_v45 = vpop.f32.mrb[0].mxu1 }
  0xf7   :  { %v1306_v36 = vadd.f32 %v1300_v32, %v216_v35  ;;  %v972_v37 = vpop.f32.mrb[2].mxu0  ;;  %v1320_v47 = vpop.f32.mrb[1].mxu1 }
  0xf8   :  { %v882_v38 = vmul.f32 -1.442695, %v1303_v34  ;;  %v1310_v39 = vadd.f32 %v972_v37, %v1300_v32  ;;  %v219_v40 = vpop.f32.mrb[3].mxu0  ;;  %v1325_v50 = vpop.f32.mrb[2].mxu1 }
  0xf9   :  { %v880_v41 = vmul.f32 -1.442695, %v1306_v36  ;;  %v1314_v42 = vadd.f32 %v1300_v32, %v219_v40  ;;  %v1330_v53 = vpop.f32.mrb[3].mxu1  ;;  %v393_v40 = vadd.f32 %v1318_v45, %v1369_v22 }
  0xfa   :  { %1097 = vpow2.f32 %v882_v38  ;;  %v883_v43 = vmul.f32 -1.442695, %v1310_v39 }
  0xfb   :  { %1099 = vpow2.f32 %v880_v41  ;;  %v881_v44 = vmul.f32 -1.442695, %v1314_v42 }
  0xfc   :  { %1101 = vpow2.f32 %v883_v43 }
  0xfd   :  { %1103 = vpow2.f32 %v881_v44  ;;  %v975_v46 = vpop.f32.mrb[4].mxu0 }
  0xfe   :  { %v1323_v48 = vadd.f32 %v975_v46, %v1300_v32  ;;  %v232_v49 = vpop.f32.mrb[5].mxu0  ;;  %v1342_v62 = vpop.f32.mrb[4].mxu1 }
  0xff   :  { %v1328_v51 = vadd.f32 %v1300_v32, %v232_v49  ;;  %v976_v52 = vpop.f32.mrb[6].mxu0  ;;  %v1344_v2 = vpop.f32.mrb[5].mxu1 }
 0x100   :  { %v886_v54 = vmul.f32 -1.442695, %v1323_v48  ;;  %v1334_v55 = vadd.f32 %v976_v52, %v1300_v32  ;;  %v235_v56 = vpop.f32.mrb[7].mxu0  ;;  %v1349_v7 = vpop.f32.mrb[6].mxu1 }
 0x101   :  { %v884_v57 = vmul.f32 -1.442695, %v1328_v51  ;;  %v1338_v58 = vadd.f32 %v1300_v32, %v235_v56  ;;  %v1354_v12 = vpop.f32.mrb[7].mxu1 }
 0x102   :  { %1105 = vpow2.f32 %v886_v54  ;;  %v887_v59 = vmul.f32 -1.442695, %v1334_v55 }
 0x103   :  { %1107 = vpow2.f32 %v884_v57  ;;  %v885_v60 = vmul.f32 -1.442695, %v1338_v58  ;;  %v385_v57 = vadd.f32 %v1369_v22, %v1320_v47 }
 0x104   :  { %v1098_v61 = vpop.eup %1097  ;;  %1109 = vpow2.f32 %v887_v59 }
 0x105   :  { %v1100_v63 = vpop.eup %1099  ;;  %v497_v0 = vadd.f32 1.0, %v1098_v61  ;;  %1111 = vpow2.f32 %v885_v60  ;;  %v979_v1 = vpop.f32.mrb[8].mxu0 }
 0x106   :  { %v1102_v3 = vpop.eup %1101  ;;  %v495_v4 = vadd.f32 1.0, %v1100_v63  ;;  %v1347_v5 = vadd.f32 %v979_v1, %v1300_v32  ;;  %v248_v6 = vpop.f32.mrb[9].mxu0 }
 0x107   :  { %v1104_v8 = vpop.eup %1103  ;;  %1113 = vrcp.f32 %v497_v0  ;;  %v498_v9 = vadd.f32 1.0, %v1102_v3  ;;  %v1352_v10 = vadd.f32 %v1300_v32, %v248_v6  ;;  %v980_v11 = vpop.f32.mrb[10].mxu0 }
 0x108   :  { %1115 = vrcp.f32 %v495_v4  ;;  %v496_v13 = vadd.f32 1.0, %v1104_v8  ;;  %v890_v14 = vmul.f32 -1.442695, %v1347_v5  ;;  %v1358_v15 = vadd.f32 %v980_v11, %v1300_v32  ;;  %v251_v16 = vpop.f32.mrb[11].mxu0  ;;  %v1371_v23 = vpop.f32.mrb[8].mxu1 }
 0x109   :  { %1117 = vrcp.f32 %v498_v9  ;;  %v888_v17 = vmul.f32 -1.442695, %v1352_v10  ;;  %v1362_v18 = vadd.f32 %v1300_v32, %v251_v16  ;;  %v1373_v27 = vpop.f32.mrb[9].mxu1 }
 0x10a   :  { %1119 = vrcp.f32 %v496_v13  ;;  %v891_v19 = vmul.f32 -1.442695, %v1358_v15  ;;  %v1378_v33 = vpop.f32.mrb[10].mxu1 }
 0x10b   :  { %1121 = vpow2.f32 %v890_v14  ;;  %v889_v20 = vmul.f32 -1.442695, %v1362_v18  ;;  %v1385_v43 = vpop.f32.mrb[11].mxu1 }
 0x10c   :  { %v1106_v21 = vpop.eup %1105  ;;  %1123 = vpow2.f32 %v888_v17 }
 0x10d   :  { %v1108_v24 = vpop.eup %1107  ;;  %v501_v25 = vadd.f32 1.0, %v1106_v21  ;;  %1125 = vpow2.f32 %v891_v19  ;;  %v983_v26 = vpop.f32.mrb[12].mxu0 }
 0x10e   :  { %v1110_v28 = vpop.eup %1109  ;;  %v499_v29 = vadd.f32 1.0, %v1108_v24  ;;  %1127 = vpow2.f32 %v889_v20  ;;  %v1376_v30 = vadd.f32 %v983_v26, %v1300_v32  ;;  %v264_v31 = vpop.f32.mrb[13].mxu0 }
 0x10f   :  { %v1112_v35 = vpop.eup %1111  ;;  %1129 = vrcp.f32 %v501_v25  ;;  %v502_v37 = vadd.f32 1.0, %v1110_v28  ;;  %v1381_v38 = vadd.f32 %v1300_v32, %v264_v31  ;;  %v984_v41 = vpop.f32.mrb[14].mxu0  ;;  %v401_v28 = vadd.f32 %v1369_v22, %v1344_v2 }
 0x110   :  { %1131 = vrcp.f32 %v499_v29  ;;  %v500_v44 = vadd.f32 1.0, %v1112_v35  ;;  %v894_v46 = vmul.f32 -1.442695, %v1376_v30  ;;  %v1389_v49 = vadd.f32 %v984_v41, %v1300_v32  ;;  %v267_v52 = vpop.f32.mrb[15].mxu0  ;;  %v1404_v6 = vpop.f32.mrb[12].mxu1 }
 0x111   :  { %v1114_v54 = vpop.eup %1113  ;;  %1133 = vrcp.f32 %v502_v37  ;;  %v892_v56 = vmul.f32 -1.442695, %v1381_v38  ;;  %v1395_v45 = vadd.f32 %v1300_v32, %v267_v52  ;;  %v396_v32 = vadd.f32 %v1325_v50, %v1369_v22  ;;  %v1409_v11 = vpop.f32.mrb[13].mxu1 }
 0x112   :  { %v1116_v59 = vpop.eup %1115  ;;  %v545_v60 = vmul.f32 %v1114_v54, %v1303_v34  ;;  %1135 = vrcp.f32 %v500_v44  ;;  %v895_v61 = vmul.f32 -1.442695, %v1389_v49  ;;  %v1411_v16 = vpop.f32.mrb[14].mxu1 }
 0x113   :  { %v1118_v63 = vpop.eup %1117  ;;  %v543_v0 = vmul.f32 %v1116_v59, %v1306_v36  ;;  %1137 = vpow2.f32 %v894_v46  ;;  %v893_v1 = vmul.f32 -1.442695, %v1395_v45  ;;  %v388_v36 = vadd.f32 %v1369_v22, %v1330_v53  ;;  %v1413_v20 = vpop.f32.mrb[15].mxu1 }
 0x114   :  { %v1120_v3 = vpop.eup %1119  ;;  %v546_v4 = vmul.f32 %v1118_v63, %v1310_v39  ;;  %1139 = vpow2.f32 %v892_v56  ;;  %v561_v47 = vmul.f32 %v545_v60, %v393_v40  ;;  %v409_v53 = vadd.f32 %v1342_v62, %v1369_v22 }
 0x115   :  { %v1122_v34 = vpop.eup %1121  ;;  %v544_v8 = vmul.f32 %v1120_v3, %v1314_v42  ;;  %1141 = vpow2.f32 %v895_v61  ;;  %v559_v9 = vmul.f32 %v543_v0, %v385_v57  ;;  %v412_v46 = vadd.f32 %v1349_v7, %v1369_v22 }
 0x116   :  { %v1124_v13 = vpop.eup %1123  ;;  %v505_v14 = vadd.f32 1.0, %v1122_v34  ;;  %1143 = vpow2.f32 %v893_v1  ;;  %v562_v39 = vmul.f32 %v546_v4, %v396_v32  ;;  %v425_v1 = vadd.f32 %v1371_v23, %v1369_v22 }
 0x117   :  { %v1126_v17 = vpop.eup %1125  ;;  %v503_v50 = vadd.f32 1.0, %v1124_v13  ;;  %v560_v19 = vmul.f32 %v544_v8, %v388_v36  ;;  %v428_v23 = vadd.f32 %v1378_v33, %v1369_v22 }
 0x118   :  { %v1128_v21 = vpop.eup %1127  ;;  %1145 = vrcp.f32 %v505_v14  ;;  %v506_v42 = vadd.f32 1.0, %v1126_v17  ;;  %v592_v24 = vpack.c.bf16 %v562_v39, %v561_v47 }
 0x119   :  { %v1130_v25 = vpop.eup %1129  ;;  %1147 = vrcp.f32 %v503_v50  ;;  %v504_v26 = vadd.f32 1.0, %v1128_v21  ;;  %v591_v29 = vpack.c.bf16 %v560_v19, %v559_v9 }
 0x11a   :  { %v1132_v31 = vpop.eup %1131  ;;  %v549_v35 = vmul.f32 %v1130_v25, %v1323_v48  ;;  %1149 = vrcp.f32 %v506_v42  ;;  %v404_v48 = vadd.f32 %v1369_v22, %v1354_v12  ;;  %v417_v12 = vadd.f32 %v1369_v22, %v1373_v27 }
 0x11b   :  { %v1134_v37 = vpop.eup %1133  ;;  %v547_v40 = vmul.f32 %v1132_v31, %v1328_v51  ;;  %1151 = vrcp.f32 %v504_v26  ;;  %1033 = vmatprep.mubr.bf16.mxu0 %v591_v29  ;;  %v420_v27 = vadd.f32 %v1369_v22, %v1385_v43  ;;  %v444_v25 = vadd.f32 %v1411_v16, %v1369_v22 }
 0x11c   :  { %v1136_v41 = vpop.eup %1135  ;;  %v550_v44 = vmul.f32 %v1134_v37, %v1334_v55  ;;  %v565_v62 = vmul.f32 %v549_v35, %v409_v53  ;;  %1034 = vmatmul.mubr.bf16.vlgmr.msra.gmra.mrb[16].mxu0 %v592_v24 }
 0x11d   :  { %v1138_v52 = vpop.eup %1137  ;;  %v548_v2 = vmul.f32 %v1136_v41, %v1338_v58  ;;  %v563_v54 = vmul.f32 %v547_v40, %v401_v28 }
 0x11e   :  { %v1140_v56 = vpop.eup %1139  ;;  %v509_v57 = vadd.f32 1.0, %v1138_v52  ;;  %v566_v51 = vmul.f32 %v550_v44, %v412_v46 }
 0x11f   :  { %v1142_v59 = vpop.eup %1141  ;;  %v507_v60 = vadd.f32 1.0, %v1140_v56  ;;  %v564_v61 = vmul.f32 %v548_v2, %v404_v48 }
 0x120   :  { %v1144_v63 = vpop.eup %1143  ;;  %1153 = vrcp.f32 %v509_v57  ;;  %v510_v55 = vadd.f32 1.0, %v1142_v59  ;;  %v594_v0 = vpack.c.bf16 %v566_v51, %v565_v62 }
 0x121   :  { %1155 = vrcp.f32 %v507_v60  ;;  %v508_v7 = vadd.f32 1.0, %v1144_v63  ;;  %v593_v58 = vpack.c.bf16 %v564_v61, %v563_v54 }
 0x122   :  { %v1146_v3 = vpop.eup %1145  ;;  %1157 = vrcp.f32 %v510_v55 }
 0x123   :  { %v1148_v4 = vpop.eup %1147  ;;  %v553_v47 = vmul.f32 %v1146_v3, %v1347_v5  ;;  %1159 = vrcp.f32 %v508_v7  ;;  %1037 = vmatprep.mubr.bf16.mxu0 %v593_v58 }
 0x124   :  { %v1150_v32 = vpop.eup %1149  ;;  %v551_v34 = vmul.f32 %v1148_v4, %v1352_v10  ;;  %1038 = vmatmul.mubr.bf16.gmra.mrb[20].mxu0 %v594_v0  ;;  %v441_v10 = vadd.f32 %v1404_v6, %v1369_v22 }
 0x125   :  { %v1152_v8 = vpop.eup %1151  ;;  %v554_v9 = vmul.f32 %v1150_v32, %v1358_v15  ;;  %v569_v36 = vmul.f32 %v553_v47, %v425_v1  ;;  %v433_v15 = vadd.f32 %v1369_v22, %v1409_v11  ;;  %v436_v11 = vadd.f32 %v1369_v22, %v1413_v20 }
 0x126   :  { %v552_v13 = vmul.f32 %v1152_v8, %v1362_v18  ;;  %v567_v14 = vmul.f32 %v551_v34, %v417_v12 }
 0x127   :  { %v570_v5 = vmul.f32 %v554_v9, %v428_v23 }
 0x128   :  { %v568_v39 = vmul.f32 %v552_v13, %v420_v27 }
 0x129   :  { %v596_v17 = vpack.c.bf16 %v570_v5, %v569_v36 }
 0x12a   :  { %v1154_v50 = vpop.eup %1153  ;;  %v595_v19 = vpack.c.bf16 %v568_v39, %v567_v14 }
 0x12b   :  { %v1156_v21 = vpop.eup %1155  ;;  %v557_v33 = vmul.f32 %v1154_v50, %v1376_v30 }
 0x12c   :  { %v1158_v42 = vpop.eup %1157  ;;  %v555_v18 = vmul.f32 %v1156_v21, %v1381_v38  ;;  %1041 = vmatprep.mubr.bf16.mxu1 %v595_v19  ;;  %v904_v38 = vld [vmem:[%s1508_s6] ss:$0 sm:$0xff] }
 0x12d   :  { %v1160_v24 = vpop.eup %1159  ;;  %v558_v43 = vmul.f32 %v1158_v42, %v1389_v49  ;;  %v573_v53 = vmul.f32 %v557_v33, %v441_v10  ;;  %1042 = vmatmul.mubr.bf16.vlgmr.msra.gmra.mrb[16].mxu1 %v596_v17 }
 0x12e   :  { %v556_v6 = vmul.f32 %v1160_v24, %v1395_v45  ;;  %v571_v26 = vmul.f32 %v555_v18, %v433_v15 }
 0x12f   :  { %v574_v28 = vmul.f32 %v558_v43, %v444_v25 }
 0x130   :  { %v572_v30 = vmul.f32 %v556_v6, %v436_v11 }
 0x131   :  { %v598_v29 = vpack.c.bf16 %v574_v28, %v573_v53 }
 0x132   :  { %v597_v31 = vpack.c.bf16 %v572_v30, %v571_v26 }
 0x134   :  { %1045 = vmatprep.mubr.bf16.mxu1 %v597_v31 }
 0x135   :  { %1046 = vmatmul.mubr.bf16.gmra.mrb[20].mxu1 %v598_v29 }
 0x1ef   :  { %v1035_v49 = vpop.f32.mrb[16].mxu0 }
 0x1f0   :  { %v820_v35 = vadd.f32 %v1035_v49, %v904_v38  ;;  %v697_v16 = vpop.f32.mrb[17].mxu0 }
 0x1f1   :  { %v818_v37 = vadd.f32 %v904_v38, %v697_v16  ;;  %v1036_v40 = vpop.f32.mrb[18].mxu0 }
 0x1f2   :  { %836 = vst [vmem:[%s1509_s7 + $0x10] sm:$0xff] %v820_v35  ;;  %v821_v22 = vadd.f32 %v1036_v40, %v904_v38  ;;  %v700_v45 = vpop.f32.mrb[19].mxu0 }
 0x1f3   :  { %834 = vst [vmem:[%s1509_s7] sm:$0xff] %v818_v37  ;;  %v819_v20 = vadd.f32 %v904_v38, %v700_v45 }
 0x1f4   :  { %837 = vst [vmem:[%s1509_s7 + $0x18] sm:$0xff] %v821_v22 }
 0x1f5   :  { %835 = vst [vmem:[%s1509_s7 + $0x8] sm:$0xff] %v819_v20 }
 0x1f7   :  { %v1039_v41 = vpop.f32.mrb[20].mxu0 }
 0x1f8   :  { %v824_v44 = vadd.f32 %v1039_v41, %v904_v38  ;;  %v713_v62 = vpop.f32.mrb[21].mxu0 }
 0x1f9   :  { %v822_v46 = vadd.f32 %v904_v38, %v713_v62  ;;  %v1040_v52 = vpop.f32.mrb[22].mxu0 }
 0x1fa   :  { %840 = vst [vmem:[%s1509_s7 + $0x30] sm:$0xff] %v824_v44  ;;  %v825_v2 = vadd.f32 %v1040_v52, %v904_v38  ;;  %v716_v54 = vpop.f32.mrb[23].mxu0 }
 0x1fb   :  { %838 = vst [vmem:[%s1509_s7 + $0x20] sm:$0xff] %v822_v46  ;;  %v823_v48 = vadd.f32 %v904_v38, %v716_v54 }
 0x1fc   :  { %841 = vst [vmem:[%s1509_s7 + $0x38] sm:$0xff] %v825_v2 }
 0x1fd   :  { %839 = vst [vmem:[%s1509_s7 + $0x28] sm:$0xff] %v823_v48 }
 0x200   :  { %v1043_v56 = vpop.f32.mrb[16].mxu1 }
 0x201   :  { %v828_v57 = vadd.f32 %v1043_v56, %v904_v38  ;;  %v729_v51 = vpop.f32.mrb[17].mxu1 }
 0x202   :  { %v826_v59 = vadd.f32 %v904_v38, %v729_v51  ;;  %v1044_v60 = vpop.f32.mrb[18].mxu1 }
 0x203   :  { %844 = vst [vmem:[%s1509_s7 + $0x50] sm:$0xff] %v828_v57  ;;  %v829_v61 = vadd.f32 %v1044_v60, %v904_v38  ;;  %v732_v63 = vpop.f32.mrb[19].mxu1 }
 0x204   :  { %842 = vst [vmem:[%s1509_s7 + $0x40] sm:$0xff] %v826_v59  ;;  %v827_v55 = vadd.f32 %v904_v38, %v732_v63 }
 0x205   :  { %845 = vst [vmem:[%s1509_s7 + $0x58] sm:$0xff] %v829_v61 }
 0x206   :  { %843 = vst [vmem:[%s1509_s7 + $0x48] sm:$0xff] %v827_v55 }
 0x208   :  { %v1047_v0 = vpop.f32.mrb[20].mxu1 }
 0x209   :  { %v832_v7 = vadd.f32 %v1047_v0, %v904_v38  ;;  %v745_v1 = vpop.f32.mrb[21].mxu1 }
 0x20a   :  { %v830_v58 = vadd.f32 %v904_v38, %v745_v1  ;;  %v1048_v3 = vpop.f32.mrb[22].mxu1 }
 0x20b   :  { %848 = vst [vmem:[%s1509_s7 + $0x70] sm:$0xff] %v832_v7  ;;  %v833_v12 = vadd.f32 %v1048_v3, %v904_v38  ;;  %v748_v4 = vpop.f32.mrb[23].mxu1 }
 0x20c   :  { %846 = vst [vmem:[%s1509_s7 + $0x60] sm:$0xff] %v830_v58  ;;  %v831_v47 = vadd.f32 %v904_v38, %v748_v4 }
 0x20d   :  { %849 = vst [vmem:[%s1509_s7 + $0x78] sm:$0xff] %v833_v12 }
 0x20e   :  { %847 = vst [vmem:[%s1509_s7 + $0x68] sm:$0xff] %v831_v47 }

</bundles_post_ra>
